<compile_context>
chip_gen: v7x
topology: tpu7x:2x2x1
jax: 0.10.0
libtpu: 0.0.40
codegen_flags: <defaults>
</compile_context>

<pallas_src>
import functools

import jax
import jax.numpy as jnp
from jax.experimental import pallas as pl
from jax.experimental.pallas import tpu as pltpu


def _round_up(x, m):
    return ((x + m - 1) // m) * m


def _cls_kernel(x_ref, w1_ref, b1_ref, w2_ref, b2_ref, o_ref):
    x = x_ref[...]                                              # (bm, in_dim)
    # Linear1: x @ W1^T + b1  (W1 passed transposed, hidden dim padded to 128k)
    h = jnp.dot(x, w1_ref[...], preferred_element_type=jnp.float32)
    h = h + b1_ref[...].astype(jnp.float32)                     # (bm, hid_p)
    # LeakyReLU (PyTorch default negative_slope = 0.01); max instead of cmp+select.
    h = jnp.maximum(h, 0.01 * h)
    # Dropout(p=0.1): eval-mode identity.
    # TODO(synk): training-mode dropout needs pltpu.prng_seed/prng_random_bits
    #             masking with 1/(1-p) scaling.
    # Linear2: h @ W2^T + b2  (cast once so bf16 weights take the bf16 MXU path)
    h = h.astype(w2_ref.dtype)
    out = jnp.dot(h, w2_ref[...], preferred_element_type=jnp.float32)
    out = out + b2_ref[...].astype(jnp.float32)                 # (bm, num_cls)
    o_ref[...] = out.astype(o_ref.dtype)


def prepare_cls_params(w1, b1, w2, b2, *, param_dtype=None):
    """One-time (cached) weight prep: transpose PyTorch-layout weights and pad hid.

    w1: (hid, in), b1: (hid,), w2: (cls, hid), b2: (cls,).
    Returns (w1_t, b1_p, w2_t, b2_p) with hid padded to a multiple of 128.
    Biases stay f32 (trivial traffic; keeps the bias add accurate).
    """
    hid_dim, _ = w1.shape
    num_cls = w2.shape[0]
    hid_p = _round_up(max(hid_dim, 128), 128)
    w1_t = jnp.pad(jnp.transpose(w1), ((0, 0), (0, hid_p - hid_dim)))   # (in, hid_p)
    b1_p = jnp.pad(b1.reshape(1, hid_dim), ((0, 0), (0, hid_p - hid_dim)))
    w2_t = jnp.pad(jnp.transpose(w2), ((0, hid_p - hid_dim), (0, 0)))   # (hid_p, cls)
    b2_p = b2.reshape(1, num_cls)
    if param_dtype is not None:
        w1_t = w1_t.astype(param_dtype)
        w2_t = w2_t.astype(param_dtype)
    return w1_t, b1_p, w2_t, b2_p


@functools.partial(jax.jit, static_argnames=("block_b", "out_dtype"))
def cls_forward(x, params, *, block_b=4096, out_dtype=None):
    """x: (B, in_dim); params from prepare_cls_params(). Returns (B, num_cls)."""
    w1_t, b1_p, w2_t, b2_p = params
    B, in_dim = x.shape
    hid_p = w1_t.shape[1]
    num_cls = w2_t.shape[1]
    odt = jnp.dtype(x.dtype) if out_dtype is None else jnp.dtype(out_dtype)

    # ---- batch tile: large (amortize ~0.35us/step), multiple of 8, but keep the
    # grid >= 2 steps when the batch allows it so v7x can use both TensorCores.
    bm = min(block_b, _round_up(B, 8))
    if B > 8:
        bm = min(bm, _round_up(pl.cdiv(B, 2), 8))
    bm = max(8, _round_up(bm, 8))
    grid = (pl.cdiv(B, bm),)          # ragged last block: OOB reads discarded on write

    # ---- scoped-VMEM limit: double-buffered x/out tiles + f32 h temps + weights,
    # with headroom; clamp to [32 MiB, 64 MiB] (v5e default is only 16 MiB).
    x_isz = jnp.dtype(x.dtype).itemsize
    o_isz = odt.itemsize
    cls_vmem = _round_up(max(num_cls, 128), 128)   # VMEM tile is lane-padded regardless
    vmem_est = (2 * bm * in_dim * x_isz
                + 2 * bm * cls_vmem * o_isz
                + 3 * bm * hid_p * 4
                + w1_t.size * jnp.dtype(w1_t.dtype).itemsize
                + w2_t.size * jnp.dtype(w2_t.dtype).itemsize
                + 4 * (b1_p.size + b2_p.size))
    vmem_limit = int(min(64 * 1024 * 1024, max(32 * 1024 * 1024, 2 * vmem_est)))

    flops = 2 * B * (in_dim * hid_p + hid_p * num_cls)
    bytes_accessed = (B * in_dim * x_isz
                      + w1_t.size * jnp.dtype(w1_t.dtype).itemsize
                      + w2_t.size * jnp.dtype(w2_t.dtype).itemsize
                      + 4 * (b1_p.size + b2_p.size)
                      + B * num_cls * o_isz)

    return pl.pallas_call(
        _cls_kernel,
        out_shape=jax.ShapeDtypeStruct((B, num_cls), odt),
        grid_spec=pltpu.PrefetchScalarGridSpec(
            num_scalar_prefetch=0,
            grid=grid,
            in_specs=[
                pl.BlockSpec((bm, in_dim), lambda i: (i, 0)),     # x tile (streams)
                # Constant-index weight/bias blocks: Pallas keeps same-block-index
                # inputs resident across grid steps (no per-step re-DMA expected).
                pl.BlockSpec((in_dim, hid_p), lambda i: (0, 0)),  # W1^T (resident)
                pl.BlockSpec((1, hid_p), lambda i: (0, 0)),       # b1
                pl.BlockSpec((hid_p, num_cls), lambda i: (0, 0)), # W2^T (resident)
                pl.BlockSpec((1, num_cls), lambda i: (0, 0)),     # b2
            ],
            # Block spans the full (unpadded) class dim -> contiguous HBM writeback
            # of exactly the logical bytes; no padded slab, no wrapper slice.
            out_specs=pl.BlockSpec((bm, num_cls), lambda i: (i, 0)),
        ),
        compiler_params=pltpu.CompilerParams(
            dimension_semantics=("parallel",),
            vmem_limit_bytes=vmem_limit),
        cost_estimate=pl.CostEstimate(
            flops=flops, transcendentals=0, bytes_accessed=bytes_accessed),
    )(x, w1_t, b1_p, w2_t, b2_p)


if __name__ == "__main__":
    # Small shapes consistent with the module (SST-5 -> num_cls=5).
    B, in_dim, hid_dim, num_cls = 8, 32, 64, 5

    key = jax.random.PRNGKey(0)
    kx, k1, kb1, k2, kb2 = jax.random.split(key, 5)

    x = jax.random.normal(kx, (B, in_dim), dtype=jnp.float32)

    # Deterministic parameter init (PyTorch-style uniform bounds), PyTorch layout.
    bound1 = 1.0 / (in_dim ** 0.5)
    w1 = jax.random.uniform(k1, (hid_dim, in_dim), jnp.float32, -bound1, bound1)
    b1 = jax.random.uniform(kb1, (hid_dim,), jnp.float32, -bound1, bound1)
    bound2 = 1.0 / (hid_dim ** 0.5)
    w2 = jax.random.uniform(k2, (num_cls, hid_dim), jnp.float32, -bound2, bound2)
    b2 = jax.random.uniform(kb2, (num_cls,), jnp.float32, -bound2, bound2)

    def reference(xv):
        h = xv @ w1.T + b1
        h = jnp.where(h > 0, h, 0.01 * h)
        return h @ w2.T + b2

    # One-time parameter prep (cached across forwards).
    params_f32 = prepare_cls_params(w1, b1, w2, b2)

    # f32 correctness (single grid step).
    out = jax.block_until_ready(cls_forward(x, params_f32))
    ref = reference(x)
    assert out.shape == (B, num_cls), out.shape
    assert jnp.allclose(out, ref, atol=1e-5, rtol=1e-5), "mismatch vs reference"

    # Ragged multi-step grid (B not a multiple of the tile; no wrapper pad/slice).
    B2 = 200
    x2 = jax.random.normal(jax.random.PRNGKey(1), (B2, in_dim), dtype=jnp.float32)
    out2 = jax.block_until_ready(cls_forward(x2, params_f32, block_b=64))
    ref2 = reference(x2)
    assert out2.shape == (B2, num_cls), out2.shape
    assert jnp.allclose(out2, ref2, atol=1e-5, rtol=1e-5), "mismatch vs reference (ragged batch)"

    # bf16 streaming path (halves HBM traffic on v6e/v7x; f32 MXU accumulation),
    # now with an accuracy tolerance check vs the f32 reference.
    params_bf16 = prepare_cls_params(w1, b1, w2, b2, param_dtype=jnp.bfloat16)
    out_bf16 = jax.block_until_ready(
        cls_forward(x.astype(jnp.bfloat16), params_bf16, out_dtype=jnp.float32))
    assert out_bf16.shape == (B, num_cls)
    assert jnp.allclose(out_bf16, ref, atol=5e-2, rtol=5e-2), "bf16 path degraded vs reference"

    print("KERNEL_OK")
</pallas_src>

<mosaic_0001>
module attributes {stable_mosaic.version = 11 : i64} {
  func.func @_cls_kernel(%arg0: i32, %arg1: memref<8x32xf32, #tpu.memory_space<vmem>>, %arg2: memref<32x128xf32, #tpu.memory_space<vmem>>, %arg3: memref<1x128xf32, #tpu.memory_space<vmem>>, %arg4: memref<128x5xf32, #tpu.memory_space<vmem>>, %arg5: memref<1x5xf32, #tpu.memory_space<vmem>>, %arg6: memref<8x5xf32, #tpu.memory_space<vmem>>) attributes {dimension_semantics = [#tpu.dimension_semantics<parallel>], iteration_bounds = array<i64: 1>, scalar_prefetch = 0 : i64, scratch_operands = 0 : i64, tpu.core_type = #tpu.core_type<tc>, window_params = [{transform_indices = @transform_0, window_bounds = array<i64: 8, 32>}, {pipeline_mode = #tpu.pipeline_mode<synchronous>, transform_indices = @transform_1, window_bounds = array<i64: 32, 128>}, {pipeline_mode = #tpu.pipeline_mode<synchronous>, transform_indices = @transform_2, window_bounds = array<i64: 1, 128>}, {pipeline_mode = #tpu.pipeline_mode<synchronous>, transform_indices = @transform_3, window_bounds = array<i64: 128, 5>}, {pipeline_mode = #tpu.pipeline_mode<synchronous>, transform_indices = @transform_4, window_bounds = array<i64: 1, 5>}, {transform_indices = @transform_5, window_bounds = array<i64: 8, 5>}]} {
    %c0 = arith.constant 0 : index
    %c0_0 = arith.constant 0 : index
    %0 = vector.load %arg1[%c0, %c0_0] : memref<8x32xf32, #tpu.memory_space<vmem>>, vector<8x32xf32>
    %c0_1 = arith.constant 0 : index
    %c0_2 = arith.constant 0 : index
    %1 = vector.load %arg2[%c0_1, %c0_2] : memref<32x128xf32, #tpu.memory_space<vmem>>, vector<32x128xf32>
    %cst = arith.constant dense<0.000000e+00> : vector<8x128xf32>
    %2 = tpu.matmul %0, %1, %cst {dimension_numbers = #tpu.dot_dimension_numbers<[1], [0], [0], [1], [0, 0, 1, 1], [], []>} : vector<8x32xf32>, vector<32x128xf32>, vector<8x128xf32> -> vector<8x128xf32>
    %c0_3 = arith.constant 0 : index
    %c0_4 = arith.constant 0 : index
    %3 = vector.load %arg3[%c0_3, %c0_4] : memref<1x128xf32, #tpu.memory_space<vmem>>, vector<1x128xf32>
    %4 = vector.broadcast %3 : vector<1x128xf32> to vector<8x128xf32>
    %5 = arith.addf %2, %4 : vector<8x128xf32>
    %cst_5 = arith.constant 0.00999999977 : f32
    %6 = vector.broadcast %cst_5 : f32 to vector<8x128xf32>
    %7 = arith.mulf %6, %5 : vector<8x128xf32>
    %8 = arith.maximumf %5, %7 : vector<8x128xf32>
    %c0_6 = arith.constant 0 : index
    %c0_7 = arith.constant 0 : index
    %9 = vector.load %arg4[%c0_6, %c0_7] : memref<128x5xf32, #tpu.memory_space<vmem>>, vector<128x5xf32>
    %cst_8 = arith.constant dense<0.000000e+00> : vector<8x5xf32>
    %10 = tpu.matmul %8, %9, %cst_8 {dimension_numbers = #tpu.dot_dimension_numbers<[1], [0], [0], [1], [0, 0, 1, 1], [], []>} : vector<8x128xf32>, vector<128x5xf32>, vector<8x5xf32> -> vector<8x5xf32>
    %c0_9 = arith.constant 0 : index
    %c0_10 = arith.constant 0 : index
    %11 = vector.load %arg5[%c0_9, %c0_10] : memref<1x5xf32, #tpu.memory_space<vmem>>, vector<1x5xf32>
    %12 = vector.broadcast %11 : vector<1x5xf32> to vector<8x5xf32>
    %13 = arith.addf %10, %12 : vector<8x5xf32>
    %c0_11 = arith.constant 0 : index
    %c0_12 = arith.constant 0 : index
    %14 = vector.load %arg6[%c0_11, %c0_12] : memref<8x5xf32, #tpu.memory_space<vmem>>, vector<8x5xf32>
    tpu.vector_store %arg6[%c0_11, %c0_12], %13 {strides = array<i32>} : memref<8x5xf32, #tpu.memory_space<vmem>>, vector<8x5xf32>,
    return
  }
  func.func @transform_0(%arg0: i32) -> (i32, i32) {
    %c0_i32 = arith.constant 0 : i32
    %c0_i32_0 = arith.constant 0 : i32
    return %arg0, %c0_i32 : i32, i32
  }
  func.func @transform_1(%arg0: i32) -> (i32, i32) {
    %c0_i32 = arith.constant 0 : i32
    %c0_i32_0 = arith.constant 0 : i32
    %c0_i32_1 = arith.constant 0 : i32
    return %c0_i32, %c0_i32_0 : i32, i32
  }
  func.func @transform_2(%arg0: i32) -> (i32, i32) {
    %c0_i32 = arith.constant 0 : i32
    %c0_i32_0 = arith.constant 0 : i32
    %c0_i32_1 = arith.constant 0 : i32
    return %c0_i32, %c0_i32_0 : i32, i32
  }
  func.func @transform_3(%arg0: i32) -> (i32, i32) {
    %c0_i32 = arith.constant 0 : i32
    %c0_i32_0 = arith.constant 0 : i32
    %c0_i32_1 = arith.constant 0 : i32
    return %c0_i32, %c0_i32_0 : i32, i32
  }
  func.func @transform_4(%arg0: i32) -> (i32, i32) {
    %c0_i32 = arith.constant 0 : i32
    %c0_i32_0 = arith.constant 0 : i32
    %c0_i32_1 = arith.constant 0 : i32
    return %c0_i32, %c0_i32_0 : i32, i32
  }
  func.func @transform_5(%arg0: i32) -> (i32, i32) {
    %c0_i32 = arith.constant 0 : i32
    %c0_i32_0 = arith.constant 0 : i32
    return %arg0, %c0_i32 : i32, i32
  }
}

</mosaic_0001>

<bundles_post_ra>
// kernel: cls_forward.1
= control target key start
LH: loop header
LB: loop body
LE: loop exit
PB: predicated region body
PF: predicated region fallthrough
CT: control target
= control target key end

     0   :  { %v347_v3 = vmov 0.0|0.0   ;;  %vm348_vm0 = vmmov 0   ;;  %v349_v6 = vmov 0.0   ;;  %s462_s0 = inlined_call_operand.vmem [shape: f32[8,32], index: 0, kind: input, shape index: {}]   ;;  %s463_s1 = inlined_call_operand.vmem [shape: f32[32,128], index: 1, kind: input, shape index: {}]   ;;  %s464_s2 = inlined_call_operand.vmem [shape: f32[1,128], index: 2, kind: input, shape index: {}]   ;;  %s465_s3 = inlined_call_operand.vmem [shape: f32[128,5], index: 3, kind: input, shape index: {}]   ;;  %s466_s4 = inlined_call_operand.vmem [shape: f32[1,5], index: 4, kind: input, shape index: {}]   ;;  %s467_s5 = inlined_call_operand.hbm [shape: f32[8,5], index: 5, kind: output, shape index: {}]  }
   0x1   :  { %v22_v0 = vld [vmem:[%s463_s1] sm:$0xff]  ;;  %v23_v1 = vld [vmem:[%s463_s1 + $0x8] sm:$0xff]  ;;  %v24_v2 = vld [vmem:[%s463_s1 + $0x10] sm:$0xff]  ;;  %289 = vmatprep.subr.bf16.mxu0 %v347_v3  ;;  %251 = vmatprep.mubr.msk.f32.mxu0 %vm348_vm0, %v349_v6 }
   0x2   :  { %v290_v4 = vpack.c.bf16 %v23_v1, %v22_v0  ;;  %v25_v5 = vld [vmem:[%s463_s1 + $0x18] sm:$0xff]  ;;  %v109_v7 = vld [vmem:[%s465_s3] sm:$0xff]  ;;  %295 = vmatprep.subr.bf16.mxu1 %v347_v3  ;;  %v110_v8 = vld [vmem:[%s465_s3 + $0x8] sm:$0xff]  ;;  %286 = vmatprep.mubr.msk.f32.mxu1 %vm348_vm0, %v349_v6 }
   0x3   :  { %v111_v9 = vld [vmem:[%s465_s3 + $0x10] sm:$0xff]  ;;  %v112_v10 = vld [vmem:[%s465_s3 + $0x18] sm:$0xff]  ;;  %v293_v11 = vpack.c.bf16 %v25_v5, %v24_v2  ;;  %v296_v12 = vpack.c.bf16 %v110_v8, %v109_v7  ;;  %v113_v14 = vld [vmem:[%s465_s3 + $0x20] sm:$0xff] }
   0x4   :  { %291 = vmatpush3.bf16.msra.mxu0 %v290_v4  ;;  %v299_v13 = vpack.c.bf16 %v112_v10, %v111_v9  ;;  %v114_v15 = vld [vmem:[%s465_s3 + $0x28] sm:$0xff] }
   0x5   :  { %292 = vmatprep.subr.bf16.mxu0 %v347_v3  ;;  %297 = vmatpush3.bf16.msra.mxu1 %v296_v12 }
   0x6   :  { %298 = vmatprep.subr.bf16.mxu1 %v347_v3 }
   0x7   :  { %10 = vsyncpa [#allocation3], 0  ;;  %v21_v16 = vld [vmem:[%s462_s0] sm:$0xff]  ;;  %vm33_vm1 = vcmask 261120   ;;  %v302_v17 = vpack.c.bf16 %v114_v15, %v113_v14  ;;  %v115_v18 = vld [vmem:[%s465_s3 + $0x30] sm:$0xff]  ;;  %s350_s11 = smov [#allocation2]  }
   0x8   :  { %294 = vmatpush3.bf16.msra.mxu0 %v293_v11  ;;  %v116_v19 = vld [vmem:[%s465_s3 + $0x38] sm:$0xff]  ;;  %v117_v21 = vld [vmem:[%s465_s3 + $0x40] sm:$0xff]  ;;  %v118_v22 = vld [vmem:[%s465_s3 + $0x48] sm:$0xff]  ;;  %s210_s12 = sshll.u32 %s350_s11, 4  ;;  %vm202_vm2 = vcmask 39936   ;;  %s211_s12 = int_to_ptr.vmem [resolvable:$true] %s210_s12 }
   0x9   :  { %300 = vmatpush3.bf16.msra.mxu1 %v299_v13  ;;  %v305_v20 = vpack.c.bf16 %v116_v19, %v115_v18  ;;  %v308_v23 = vpack.c.bf16 %v118_v22, %v117_v21  ;;  %v119_v24 = vld [vmem:[%s465_s3 + $0x50] sm:$0xff]  ;;  %v120_v25 = vld [vmem:[%s465_s3 + $0x58] sm:$0xff]  ;;  %v121_v27 = vld [vmem:[%s465_s3 + $0x60] sm:$0xff]  ;;  %p328_p1 = scmp.lt.s32.totalorder %s211_s12, %s211_s12 }
   0xa   :  { %301 = vmatprep.subr.bf16.mxu1 %v347_v3  ;;  %v311_v26 = vpack.c.bf16 %v120_v25, %v119_v24  ;;  %v122_v28 = vld [vmem:[%s465_s3 + $0x68] sm:$0xff]  ;;  %v123_v30 = vld [vmem:[%s465_s3 + $0x70] sm:$0xff]  ;;  %v124_v31 = vld [vmem:[%s465_s3 + $0x78] sm:$0xff]  ;;  %s323_s3 = scalar_lea.vmem %s211_s12, 128 }
   0xb   :  { %252 = vmatmul.mubr.msk.f32.vlgmr.msra.gmra.mrb[0].mxu0 %vm33_vm1, %v21_v16  ;;  %v314_v29 = vpack.c.bf16 %v122_v28, %v121_v27  ;;  %v317_v32 = vpack.c.bf16 %v124_v31, %v123_v30  ;;  %v218_v33 = vld [vmem:[%s464_s2] ss:$0 sm:$0xff]  ;;  %p324_p0 = scmp.ne.s32.totalorder %s211_s12, %s323_s3  ;;  %p329_p2 = scmp.lt.s32.totalorder %s323_s3, %s323_s3 }
   0xc   :  { %v220_v39 = vld [vmem:[%s466_s4] ss:$0 sm:$0xff] }
   0xd   :  { %303 = vmatpush3.bf16.msra.mxu1 %v302_v17  ;;  %p330_p3 = por %p329_p2, %p328_p1 }
   0xe   :  { %304 = vmatprep.subr.bf16.mxu1 %v347_v3 }
   0xf   :  { %p331_p4 = pnand %p330_p3, %p324_p0 }
  0x11   :  { %306 = vmatpush3.bf16.msra.mxu1 %v305_v20 }
  0x12   :  { %307 = vmatprep.subr.bf16.mxu1 %v347_v3 }
  0x15   :  { %309 = vmatpush3.bf16.msra.mxu1 %v308_v23 }
  0x16   :  { %310 = vmatprep.subr.bf16.mxu1 %v347_v3 }
  0x19   :  { %312 = vmatpush3.bf16.msra.mxu1 %v311_v26 }
  0x1a   :  { %313 = vmatprep.subr.bf16.mxu1 %v347_v3 }
  0x1d   :  { %315 = vmatpush3.bf16.msra.mxu1 %v314_v29 }
  0x1e   :  { %316 = vmatprep.subr.bf16.mxu1 %v347_v3 }
  0x21   :  { %318 = vmatpush3.bf16.msra.mxu1 %v317_v32 }
  0xde   :  { %v103_v34 = vpop.f32.mrb[0].mxu0 }
  0xdf   :  { %v104_v35 = vadd.f32 %v218_v33, %v103_v34  ;;  %v253_v36 = vpop.f32.mrb[1].mxu0 }
  0xe1   :  { %v107_v37 = vmul.f32 0.01, %v104_v35 }
  0xe3   :  { %v108_v38 = vmax.f32 %v104_v35, %v107_v37 }
  0xe5   :  { %287 = vmatmul.mubr.f32.vlgmr.msra.gmra.mrb[0].mxu1 %v108_v38 }
 0x1b8   :  { %v198_v40 = vpop.f32.mrb[0].mxu1 }
 0x1b9   :  { %v199_v41 = vadd.f32 %v220_v39, %v198_v40  ;;  %v288_v42 = vpop.f32.mrb[1].mxu1 }
 0x1bb   :  { %203 = vst.msk [vmem:[#allocation2] sm:$0xff] %vm202_vm2, %v199_v41 }
 0x1bc   :  { %334 = shalt.err (!%p331_p4)
}
 0x1bd   :  { %s335_s14 = scalar_lea.hbm %s467_s5, 128 }
 0x1be   :  { %p336_p5 = scmp.ne.s32.totalorder %s467_s5, %s335_s14  ;;  %p339_p6 = scmp.lt.u32.totalorder %s335_s14, %s467_s5 }
 0x1c0   :  { %p341_p7 = pnand %p339_p6, %p336_p5 }
 0x1c2   :  { %344 = shalt.err (!%p341_p7)
}
 0x1c3   :  { %213 = dma.vmem_to_hbm [thread:$0]  %s211_s12, 128, %s467_s5, [#allocation3]  }
 0x1c4   :  { %345 = dma.done.wait [#allocation3], 128  }
 0x1c5   :  { %346 = vsyncadd [#allocation3], 4294967168 }
 0x1c6   :  { %217 = vsyncpa [#allocation3], 1 }

</bundles_post_ra>
